<compile_context>
chip_gen: v5e
topology: v5e:2x2
jax: 0.10.0
libtpu: 0.0.40
codegen_flags: <defaults>
</compile_context>

<pallas_src>
import functools

import jax
import jax.numpy as jnp
from jax.experimental import pallas as pl
from jax.experimental.pallas import tpu as pltpu

f32 = jnp.float32
bf16 = jnp.bfloat16
LANE = 128            # TPU lane width: feature axis padded to this
SUB = 8               # sublane multiple for row tiles
MAX_PAIR_TILE = 2048  # pair rows per block (review: 1024-2048)
MAX_ATOM_TILE = 1024  # atom rows per block (review: 512-1024)


def _round_up(n, m):
    return ((n + m - 1) // m) * m


def _pick_tile(n_rows, max_tile):
    """Row tile: multiple of 8 sublanes, capped, and (when possible) chosen so
    the 'parallel' grid axis has >= 2 steps and can shard across v7x's two
    TensorCores.  The extra grid step costs ~0.35us on 1-TC v5e/v6e: harmless."""
    padded = _round_up(max(n_rows, 1), SUB)
    half = _round_up(-(-padded // 2), SUB)      # ceil(padded/2) rounded to 8
    tile = min(max_tile, max(half, SUB))
    rows_p = _round_up(padded, tile)
    return tile, rows_p


def _softplus(x):
    # numerically stable softplus (== torch.nn.Softplus, beta=1); kept in f32
    # (v5e EUP/VPU have no bf16) -- only matmul operands are cast to bf16.
    return jnp.maximum(x, 0.0) + jnp.log1p(jnp.exp(-jnp.abs(x)))


def _mm(a, w):
    # bf16 MXU operands (single-pass MXU), f32 accumulation.
    return jnp.dot(a.astype(bf16), w, preferred_element_type=f32)


# ----------------------------- kernel bodies -----------------------------

def _head_kernel(x_ref, wj_ref, bj_ref, hj_ref):
    # per-ATOM sequential_j: softplus(linear_j(softplus(x)))
    h = _softplus(x_ref[...])
    hj_ref[...] = _softplus(_mm(h, wj_ref[...]) + bj_ref[...])


def _pair_kernel(hj_ref, g_ref, wg_ref, bg_ref, o_ref):
    # vp = sequential_j(x)[idx_j] * linear_g(g_ij)
    # cheap, memory-bound: one elementwise multiply + a tiny K=n_rbf matmul.
    o_ref[...] = hj_ref[...] * (_mm(g_ref[...], wg_ref[...]) + bg_ref[...])


def _tail_kernel(x_ref, vs_ref, u_ref,
                 wi_ref, bi_ref,
                 w1_ref, b1_ref, w2_ref, b2_ref,
                 wf_ref, bf_ref, wout_ref, bout_ref,
                 y_ref, xnew_ref,
                 *, n_inter, n_atomic, n_out):
    # Whole per-atom tail fused; residual weights stacked along axis 0 and
    # VMEM-resident.  Residual loops kept unrolled: L is small and there is no
    # spill evidence (switch to lax.fori_loop only if ld/st slot util shows
    # spills at larger tiles).
    def residual(t, l):
        h = _mm(_softplus(t), w1_ref[l]) + b1_ref[l]
        h = _mm(_softplus(h), w2_ref[l]) + b2_ref[l]
        return t + h

    x = x_ref[...]

    # vm = sequential_i(x);  v = scatter_add(vp) + vm
    vm = _softplus(_mm(_softplus(x), wi_ref[...]) + bi_ref[...])
    v = vs_ref[...] + vm

    for l in range(n_inter):                        # interaction residuals
        v = residual(v, l)

    # x_new = u * x + linear_f(act(v))
    xn = u_ref[...] * x + _mm(_softplus(v), wf_ref[...]) + bf_ref[...]

    for l in range(n_inter, n_inter + n_atomic):    # module-level atomic residuals
        xn = residual(xn, l)
    xnew_ref[...] = xn

    y = xn
    for l in range(n_inter + n_atomic, n_inter + n_atomic + n_out):  # output head
        y = residual(y, l)
    y_ref[...] = _mm(_softplus(y), wout_ref[...]) + bout_ref[...]


# ----------------------------- pallas_call glue -----------------------------

def _head_call(x, wj, bj, *, tile):
    A, F = x.shape
    rows = lambda i: (i, 0)
    full = lambda i: (0, 0)
    return pl.pallas_call(
        _head_kernel,
        out_shape=jax.ShapeDtypeStruct((A, F), f32),
        grid_spec=pltpu.PrefetchScalarGridSpec(
            num_scalar_prefetch=0,
            grid=(A // tile,),
            in_specs=[
                pl.BlockSpec((tile, F), rows),   # x tile
                pl.BlockSpec((F, F), full),      # Wj (bf16, resident)
                pl.BlockSpec((1, F), full),      # bj
            ],
            out_specs=pl.BlockSpec((tile, F), rows),
        ),
        compiler_params=pltpu.CompilerParams(
            dimension_semantics=("parallel",)),
    )(x, wj, bj)


def _pair_call(hj_g, g, wg, bg, *, tile):
    P, F = hj_g.shape
    R = g.shape[1]                # true n_rbf (NOT padded to 128 lanes)
    rows = lambda i: (i, 0)
    full = lambda i: (0, 0)
    return pl.pallas_call(
        _pair_kernel,
        out_shape=jax.ShapeDtypeStruct((P, F), f32),
        grid_spec=pltpu.PrefetchScalarGridSpec(
            num_scalar_prefetch=0,
            grid=(P // tile,),
            in_specs=[
                pl.BlockSpec((tile, F), rows),   # gathered hj tile
                pl.BlockSpec((tile, R), rows),   # g tile (last dim == full n_rbf)
                pl.BlockSpec((R, F), full),      # Wg (bf16, resident)
                pl.BlockSpec((1, F), full),      # bg
            ],
            out_specs=pl.BlockSpec((tile, F), rows),
        ),
        compiler_params=pltpu.CompilerParams(
            dimension_semantics=("parallel",)),
    )(hj_g, g, wg, bg)


def _tail_call(x, vs, pk, *, tile):
    A, F = x.shape
    L = pk["w1s"].shape[0]
    rows = lambda i: (i, 0)
    full2 = lambda i: (0, 0)
    full3 = lambda i: (0, 0, 0)
    kernel = functools.partial(_tail_kernel,
                               n_inter=pk["n_inter"],
                               n_atomic=pk["n_atomic"],
                               n_out=pk["n_out"])
    # NOTE: weight blocks have constant index_maps so their VMEM copies are
    # reused across grid steps.  Total VMEM (<~6 MiB at tile=1024, bf16
    # weights) is far below the default scoped limit on every generation, so
    # no vmem_limit_bytes / single-buffering of the weights is needed.
    return pl.pallas_call(
        kernel,
        out_shape=(jax.ShapeDtypeStruct((A, F), f32),   # y (output head)
                   jax.ShapeDtypeStruct((A, F), f32)),  # x after atomic residuals
        grid_spec=pltpu.PrefetchScalarGridSpec(
            num_scalar_prefetch=0,
            grid=(A // tile,),
            in_specs=[
                pl.BlockSpec((tile, F), rows),      # x tile
                pl.BlockSpec((tile, F), rows),      # scatter_add(vp) tile
                pl.BlockSpec((1, F), full2),        # u
                pl.BlockSpec((F, F), full2),        # Wi (bf16)
                pl.BlockSpec((1, F), full2),        # bi
                pl.BlockSpec((L, F, F), full3),     # stacked residual W1 (bf16)
                pl.BlockSpec((L, 1, F), full3),     # stacked residual b1
                pl.BlockSpec((L, F, F), full3),     # stacked residual W2 (bf16)
                pl.BlockSpec((L, 1, F), full3),     # stacked residual b2
                pl.BlockSpec((F, F), full2),        # Wf (bf16)
                pl.BlockSpec((1, F), full2),        # bf
                pl.BlockSpec((F, F), full2),        # W_out (bf16)
                pl.BlockSpec((1, F), full2),        # b_out
            ],
            out_specs=[pl.BlockSpec((tile, F), rows),
                       pl.BlockSpec((tile, F), rows)],
        ),
        compiler_params=pltpu.CompilerParams(
            dimension_semantics=("parallel",)),
    )(x, vs, pk["u"], pk["wi"], pk["bi"],
      pk["w1s"], pk["b1s"], pk["w2s"], pk["b2s"],
      pk["wf"], pk["bf"], pk["wout"], pk["bout"])


# ----------------------------- parameters -----------------------------

def init_params(key, n_atom_basis, n_rbf, n_interactions,
                n_output_residual, n_atomic_residual):
    keys = list(jax.random.split(key, 64))
    it = iter(keys)

    def torch_default_linear(k, fan_in, fan_out):
        kw, kb = jax.random.split(k)
        lim = 1.0 / jnp.sqrt(fan_in)
        w = jax.random.uniform(kw, (fan_in, fan_out), f32, -lim, lim)
        b = jax.random.uniform(kb, (1, fan_out), f32, -lim, lim)
        return w, b

    def xavier_linear(k, fan_in, fan_out):
        lim = jnp.sqrt(6.0 / (fan_in + fan_out))
        w = jax.random.uniform(k, (fan_in, fan_out), f32, -lim, lim)
        return w, jnp.zeros((1, fan_out), f32)      # bias zeroed in reference

    def residual_stack(n):
        return [(torch_default_linear(next(it), n_atom_basis, n_atom_basis),
                 torch_default_linear(next(it), n_atom_basis, n_atom_basis))
                for _ in range(n)]

    p = {}
    # PhysNetInteraction
    p["wf"], p["bf"] = xavier_linear(next(it), n_atom_basis, n_atom_basis)
    p["wg"] = jnp.zeros((n_rbf, n_atom_basis), f32)             # weight.fill_(0.0)
    p["bg"] = jnp.zeros((1, n_atom_basis), f32)
    p["wj"], p["bj"] = xavier_linear(next(it), n_atom_basis, n_atom_basis)
    p["wi"], p["bi"] = xavier_linear(next(it), n_atom_basis, n_atom_basis)
    p["u"] = jnp.ones((1, n_atom_basis), f32)
    p["inter_res"] = residual_stack(n_interactions)
    # Module-level atomic residuals
    p["atomic_res"] = residual_stack(n_atomic_residual)
    # Output head
    p["out_res"] = residual_stack(n_output_residual)
    p["w_out"] = jnp.zeros((n_atom_basis, n_atom_basis), f32)   # zeroed in reference
    p["b_out"] = jnp.zeros((1, n_atom_basis), f32)
    return p


def pack_params(p, n_atom_basis, n_rbf):
    """Pad the feature axis to 128 lanes, stack residual weights, cast matmul
    weights to bf16 (accumulation stays f32 in-kernel).  The RBF axis is left
    unpadded.  Correctness of the lane padding relies on zero weight rows/cols
    killing softplus(0)=log(2) in dead lanes -- zeros are exact in bf16 too."""
    F = _round_up(n_atom_basis, LANE)

    def pad(a, r, c):
        return jnp.pad(a, ((0, r - a.shape[0]), (0, c - a.shape[1])))

    pw = lambda w: pad(w, F, F).astype(bf16)
    pb = lambda b: pad(b, 1, F)                 # biases / u stay f32

    res_all = list(p["inter_res"]) + list(p["atomic_res"]) + list(p["out_res"])
    if res_all:
        w1s = jnp.stack([pw(w1) for (w1, _b1), (_w2, _b2) in res_all])
        b1s = jnp.stack([pb(b1) for (_w1, b1), (_w2, _b2) in res_all])
        w2s = jnp.stack([pw(w2) for (_w1, _b1), (w2, _b2) in res_all])
        b2s = jnp.stack([pb(b2) for (_w1, _b1), (_w2, b2) in res_all])
    else:  # dummy (unused) layer so the stacked refs are never zero-sized
        w1s = jnp.zeros((1, F, F), bf16); b1s = jnp.zeros((1, 1, F), f32)
        w2s = jnp.zeros((1, F, F), bf16); b2s = jnp.zeros((1, 1, F), f32)

    return {
        "F": F,
        "n_inter": len(p["inter_res"]),
        "n_atomic": len(p["atomic_res"]),
        "n_out": len(p["out_res"]),
        "wj": pw(p["wj"]), "bj": pb(p["bj"]),
        "wg": pad(p["wg"], n_rbf, F).astype(bf16), "bg": pb(p["bg"]),
        "wi": pw(p["wi"]), "bi": pb(p["bi"]),
        "wf": pw(p["wf"]), "bf": pb(p["bf"]),
        "u": pb(p["u"]),
        "wout": pw(p["w_out"]), "bout": pb(p["b_out"]),
        "w1s": w1s, "b1s": b1s, "w2s": w2s, "b2s": b2s,
    }


# ----------------------------- forward pass -----------------------------

def forward(pk, x, g_ij, idx_i, idx_j, n_atoms):
    nab = x.shape[-1]
    n_pairs = g_ij.shape[0]
    F = pk["F"]

    atom_tile, atoms_p = _pick_tile(n_atoms, MAX_ATOM_TILE)
    pair_tile, pairs_p = _pick_tile(n_pairs, MAX_PAIR_TILE)

    x_p = jnp.pad(x.astype(f32), ((0, atoms_p - n_atoms), (0, F - nab)))
    g_p = jnp.pad(g_ij.astype(f32), ((0, pairs_p - n_pairs), (0, 0)))  # RBF not lane-padded

    # 1) per-ATOM sequential_j (moved off the pair axis; see header).
    hj = _head_call(x_p, pk["wj"], pk["bj"], tile=atom_tile)

    # 2) gather + pair stage.  Gather kept in plain JAX; padded pair rows read
    #    atom row 0 and are discarded by the vp[:n_pairs] slice below.
    # TODO(synk): fuse gather + segment_sum into the pair stage (sort pairs by
    # idx_i, scalar-prefetch segment offsets + idx_j, keep the per-atom hj
    # table VMEM-resident, grouped/MoE accumulation) to remove the (P,F) HBM
    # round trips; padded rows would then need explicit masking.
    idx_j_p = jnp.pad(idx_j, (0, pairs_p - n_pairs))
    hj_g = hj[idx_j_p]
    vp = _pair_call(hj_g, g_p, pk["wg"], pk["bg"], tile=pair_tile)

    vs = jax.ops.segment_sum(vp[:n_pairs], idx_i, num_segments=n_atoms)
    vs_p = jnp.pad(vs, ((0, atoms_p - n_atoms), (0, 0)))

    # 3) fused per-atom tail.
    y_p, xn_p = _tail_call(x_p, vs_p, pk, tile=atom_tile)
    return y_p[:n_atoms, :nab], xn_p[:n_atoms, :nab]


# ----------------------------- pure-JAX reference -----------------------------

def reference_forward(p, x, g_ij, idx_i, idx_j, n_atoms, matmul_dtype=None):
    """matmul_dtype=None  -> pure f32, HIGHEST precision (the PyTorch spec).
       matmul_dtype=bf16  -> mirrors the kernel's bf16-operand / f32-accumulate
                             matmuls, for a tight numerical comparison."""
    sp = _softplus
    if matmul_dtype is None:
        lin = lambda t, w, b: jnp.dot(t, w, precision=jax.lax.Precision.HIGHEST) + b
    else:
        lin = lambda t, w, b: jnp.dot(t.astype(matmul_dtype), w.astype(matmul_dtype),
                                      preferred_element_type=f32) + b

    def res(t, layer):
        (w1, b1), (w2, b2) = layer
        return t + lin(sp(lin(sp(t), w1, b1)), w2, b2)

    x = x.astype(f32)
    x_j = x[idx_j]
    vp = sp(lin(sp(x_j), p["wj"], p["bj"])) * lin(g_ij.astype(f32), p["wg"], p["bg"])
    vm = sp(lin(sp(x), p["wi"], p["bi"]))
    v = jax.ops.segment_sum(vp, idx_i, num_segments=n_atoms) + vm
    for layer in p["inter_res"]:
        v = res(v, layer)
    xn = p["u"] * x + lin(sp(v), p["wf"], p["bf"])
    for layer in p["atomic_res"]:
        xn = res(xn, layer)
    y = xn
    for layer in p["out_res"]:
        y = res(y, layer)
    y = lin(sp(y), p["w_out"], p["b_out"])
    return y, xn


# ----------------------------- demo -----------------------------

if __name__ == "__main__":
    n_atom_basis = 32
    n_rbf = 16
    n_interactions = 2
    n_output_residual = 2
    n_atomic_residual = 2
    n_atoms = 8
    n_pairs = 24

    key = jax.random.PRNGKey(0)
    kx, kg, ki, kj, kp, kq = jax.random.split(key, 6)
    x = jax.random.normal(kx, (n_atoms, n_atom_basis), f32)
    g_ij = jax.random.normal(kg, (n_pairs, n_rbf), f32)
    idx_i = jax.random.randint(ki, (n_pairs,), 0, n_atoms)
    idx_j = jax.random.randint(kj, (n_pairs,), 0, n_atoms)

    params = init_params(kp, n_atom_basis, n_rbf, n_interactions,
                         n_output_residual, n_atomic_residual)

    def check(prm):
        packed = pack_params(prm, n_atom_basis, n_rbf)
        out, x_out = forward(packed, x, g_ij, idx_i, idx_j, n_atoms)
        jax.block_until_ready((out, x_out))
        assert out.shape == (n_atoms, n_atom_basis)
        assert x_out.shape == (n_atoms, n_atom_basis)
        # tight check vs a reference that mirrors the kernel's bf16-operand /
        # f32-accumulate matmuls (zero lane padding is exact, so these agree
        # to MXU accumulation-order noise)
        r_out, r_x = reference_forward(prm, x, g_ij, idx_i, idx_j, n_atoms,
                                       matmul_dtype=bf16)
        assert jnp.allclose(out, r_out, atol=2e-3, rtol=2e-3)
        assert jnp.allclose(x_out, r_x, atol=2e-3, rtol=2e-3)
        # looser sanity check vs the pure-f32 HIGHEST-precision spec reference:
        # bf16 MXU operands introduce ~1e-3 relative rounding per matmul, which
        # accumulates over the ~16-matmul chain (documented precision delta).
        f_out, f_x = reference_forward(prm, x, g_ij, idx_i, idx_j, n_atoms)
        assert jnp.allclose(out, f_out, atol=1e-1, rtol=1e-1)
        assert jnp.allclose(x_out, f_x, atol=1e-1, rtol=1e-1)

    # spec-faithful run (wg / w_out are zero-initialized per the reference)
    check(params)

    # extra check with the zero-initialized weights replaced by random values
    # so the pairwise and output-linear paths are numerically exercised too
    k1, k2, k3, k4 = jax.random.split(kq, 4)
    params_rand = dict(params)
    params_rand["wg"] = 0.1 * jax.random.normal(k1, (n_rbf, n_atom_basis), f32)
    params_rand["bg"] = 0.1 * jax.random.normal(k2, (1, n_atom_basis), f32)
    params_rand["w_out"] = 0.1 * jax.random.normal(k3, (n_atom_basis, n_atom_basis), f32)
    params_rand["b_out"] = 0.1 * jax.random.normal(k4, (1, n_atom_basis), f32)
    check(params_rand)

    print("KERNEL_OK")
</pallas_src>

<mosaic_0001>
module attributes {stable_mosaic.version = 11 : i64} {
  func.func @_head_kernel(%arg0: i32, %arg1: memref<8x128xf32, #tpu.memory_space<vmem>>, %arg2: memref<128x128xbf16, #tpu.memory_space<vmem>>, %arg3: memref<1x128xf32, #tpu.memory_space<vmem>>, %arg4: memref<8x128xf32, #tpu.memory_space<vmem>>) attributes {dimension_semantics = [#tpu.dimension_semantics<parallel>], iteration_bounds = array<i64: 1>, scalar_prefetch = 0 : i64, scratch_operands = 0 : i64, tpu.core_type = #tpu.core_type<tc>, window_params = [{transform_indices = @transform_0, window_bounds = array<i64: 8, 128>}, {pipeline_mode = #tpu.pipeline_mode<synchronous>, transform_indices = @transform_1, window_bounds = array<i64: 128, 128>}, {pipeline_mode = #tpu.pipeline_mode<synchronous>, transform_indices = @transform_2, window_bounds = array<i64: 1, 128>}, {transform_indices = @transform_3, window_bounds = array<i64: 8, 128>}]} {
    %c0 = arith.constant 0 : index
    %c0_0 = arith.constant 0 : index
    %0 = vector.load %arg1[%c0, %c0_0] : memref<8x128xf32, #tpu.memory_space<vmem>>, vector<8x128xf32>
    %cst = arith.constant 0.000000e+00 : f32
    %1 = vector.broadcast %cst : f32 to vector<8x128xf32>
    %2 = arith.maximumf %0, %1 : vector<8x128xf32>
    %3 = math.absf %0 : vector<8x128xf32>
    %cst_1 = arith.constant 0.000000e+00 : f32
    %4 = vector.broadcast %cst_1 : f32 to vector<8x128xf32>
    %5 = arith.subf %4, %3 : vector<8x128xf32>
    %6 = math.exp %5 : vector<8x128xf32>
    %7 = math.log1p %6 : vector<8x128xf32>
    %8 = arith.addf %2, %7 : vector<8x128xf32>
    %c0_2 = arith.constant 0 : index
    %c0_3 = arith.constant 0 : index
    %9 = vector.load %arg2[%c0_2, %c0_3] : memref<128x128xbf16, #tpu.memory_space<vmem>>, vector<128x128xbf16>
    %10 = arith.truncf %8 : vector<8x128xf32> to vector<8x128xbf16>
    %cst_4 = arith.constant dense<0.000000e+00> : vector<8x128xf32>
    %11 = tpu.matmul %10, %9, %cst_4 {dimension_numbers = #tpu.dot_dimension_numbers<[1], [0], [0], [1], [0, 0, 1, 1], [], []>} : vector<8x128xbf16>, vector<128x128xbf16>, vector<8x128xf32> -> vector<8x128xf32>
    %c0_5 = arith.constant 0 : index
    %c0_6 = arith.constant 0 : index
    %12 = vector.load %arg3[%c0_5, %c0_6] : memref<1x128xf32, #tpu.memory_space<vmem>>, vector<1x128xf32>
    %13 = vector.broadcast %12 : vector<1x128xf32> to vector<8x128xf32>
    %14 = arith.addf %11, %13 : vector<8x128xf32>
    %cst_7 = arith.constant 0.000000e+00 : f32
    %15 = vector.broadcast %cst_7 : f32 to vector<8x128xf32>
    %16 = arith.maximumf %14, %15 : vector<8x128xf32>
    %17 = math.absf %14 : vector<8x128xf32>
    %cst_8 = arith.constant 0.000000e+00 : f32
    %18 = vector.broadcast %cst_8 : f32 to vector<8x128xf32>
    %19 = arith.subf %18, %17 : vector<8x128xf32>
    %20 = math.exp %19 : vector<8x128xf32>
    %21 = math.log1p %20 : vector<8x128xf32>
    %22 = arith.addf %16, %21 : vector<8x128xf32>
    %c0_9 = arith.constant 0 : index
    %c0_10 = arith.constant 0 : index
    %23 = vector.load %arg4[%c0_9, %c0_10] : memref<8x128xf32, #tpu.memory_space<vmem>>, vector<8x128xf32>
    tpu.vector_store %arg4[%c0_9, %c0_10], %22 {strides = array<i32>} : memref<8x128xf32, #tpu.memory_space<vmem>>, vector<8x128xf32>,
    return
  }
  func.func @transform_0(%arg0: i32) -> (i32, i32) {
    %c0_i32 = arith.constant 0 : i32
    %c0_i32_0 = arith.constant 0 : i32
    return %arg0, %c0_i32 : i32, i32
  }
  func.func @transform_1(%arg0: i32) -> (i32, i32) {
    %c0_i32 = arith.constant 0 : i32
    %c0_i32_0 = arith.constant 0 : i32
    %c0_i32_1 = arith.constant 0 : i32
    return %c0_i32, %c0_i32_0 : i32, i32
  }
  func.func @transform_2(%arg0: i32) -> (i32, i32) {
    %c0_i32 = arith.constant 0 : i32
    %c0_i32_0 = arith.constant 0 : i32
    %c0_i32_1 = arith.constant 0 : i32
    return %c0_i32, %c0_i32_0 : i32, i32
  }
  func.func @transform_3(%arg0: i32) -> (i32, i32) {
    %c0_i32 = arith.constant 0 : i32
    %c0_i32_0 = arith.constant 0 : i32
    return %arg0, %c0_i32 : i32, i32
  }
}

</mosaic_0001>

<bundles_post_ra>
// kernel: tpu_custom_call.1
= control target key start
LH: loop header
LB: loop body
LE: loop exit
PB: predicated region body
PF: predicated region fallthrough
CT: control target
= control target key end

     0   :  { %8 = vsyncpa [#allocation3], 0  ;;  %s346_s0 = inlined_call_operand.hbm [shape: f32[8,128], index: 0, kind: input, shape index: {}]   ;;  %s347_s1 = inlined_call_operand.hbm [shape: bf16[128,128], index: 1, kind: input, shape index: {}]   ;;  %s348_s2 = inlined_call_operand.vmem [shape: f32[1,128], index: 2, kind: input, shape index: {}]   ;;  %s349_s3 = inlined_call_operand.hbm [shape: f32[8,128], index: 3, kind: output, shape index: {}]  }
   0x1   :  { %9 = vsyncpa [#allocation6], 0 }
   0x2   :  { %10 = vsyncpa [#allocation4], 0  ;;  %s16_s14 = sshll.u32 %s346_s0, 4  ;;  %s309_s15 = smov [#allocation2]   ;;  %s17_s14 = int_to_ptr.hbm [resolvable:$true] %s16_s14 }
   0x3   :  { %s18_s16 = sshll.u32 %s309_s15, 4  ;;  %s26_s19 = sshll.u32 %s347_s1, 4  ;;  %s19_s16 = int_to_ptr.vmem [resolvable:$true] %s18_s16  ;;  %s27_s19 = int_to_ptr.hbm [resolvable:$true] %s26_s19 }
   0x4   :  { %21 = dma.hbm_to_vmem [thread:$0]  %s17_s14, 128, %s19_s16, [#allocation3]  }
   0x5   :  { %s310_s20 = smov [#allocation5]   ;;  %s311_s22 = smov 64  }
   0x6   :  { %s28_s21 = sshll.u32 %s310_s20, 4  ;;  %s312_s23 = smov 4   ;;  %s29_s21 = int_to_ptr.vmem [resolvable:$true] %s28_s21 }
   0x7   :  { %34 = dma.hbm_to_vmem [thread:$0]  %s27_s19, 1024, %s29_s21, [#allocation6], %s311_s22, %s311_s22, %s312_s23  }
   0x8   :  { %303 = dma.done.wait [#allocation3], 128  }
   0x9   :  { %304 = vsyncadd [#allocation3], 4294967168 }
   0xa   :  { %305 = dma.done.wait [#allocation6], 1024  }
   0xb   :  { %306 = vsyncadd [#allocation6], 4294966272  ;;  %v216_v0 = vld [vmem:[#allocation5 + $0x38] sm:$0xff]  ;;  %v215_v1 = vld [vmem:[#allocation5 + $0x30] sm:$0xff]  ;;  %s313_s24 = smov [#allocation7]   ;;  %s166_s27 = sshll.u32 %s349_s3, 4  ;;  %s167_s27 = int_to_ptr.hbm [resolvable:$true] %s166_s27 }
   0xc   :  { %130 = vmatpush.bf16.msra.mxu0 %v216_v0  ;;  %v45_v2 = vld [vmem:[#allocation2] sm:$0xff]  ;;  %v214_v5 = vld [vmem:[#allocation5 + $0x28] sm:$0xff]  ;;  %v213_v7 = vld [vmem:[#allocation5 + $0x20] sm:$0xff]  ;;  %s164_s25 = sshll.u32 %s313_s24, 4  ;;  %s165_s25 = int_to_ptr.vmem [resolvable:$true] %s164_s25 }
   0xd   :  { %v47_v3 = vand.u32 2147483647, %v45_v2  ;;  %v212_v8 = vld [vmem:[#allocation5 + $0x18] sm:$0xff]  ;;  %v211_v12 = vld [vmem:[#allocation5 + $0x10] sm:$0xff]  ;;  %v210_v15 = vld [vmem:[#allocation5 + $0x8] sm:$0xff]  ;;  %v46_v18 = vmax.f32 %v45_v2, 0.0 }
   0xe   :  { %v209_v20 = vld [vmem:[#allocation5] sm:$0xff]  ;;  %v222_v24 = vld [vmem:[%s348_s2] ss:$0 sm:$0xff] }
   0xf   :  { %v48_v4 = vsub.f32 0.0, %v47_v3 }
  0x10   :  { %131 = vmatpush.bf16.msra.mxu0 %v215_v1 }
  0x11   :  { %v49_v6 = vmul.f32 1.442695, %v48_v4 }
  0x13   :  { %223 = vpow2.f32 %v49_v6 }
  0x14   :  { %132 = vmatpush.bf16.msra.mxu0 %v214_v5 }
  0x18   :  { %133 = vmatpush.bf16.msra.mxu0 %v213_v7 }
  0x19   :  { %v224_v9 = vpop.eup %223 }
  0x1a   :  { %v51_v10 = vadd.f32 1.0, %v224_v9  ;;  %v54_v11 = vmul.f32 -0.5, %v224_v9  ;;  %v57_v14 = vand.u32 2147483647, %v224_v9 }
  0x1c   :  { %134 = vmatpush.bf16.msra.mxu0 %v212_v8  ;;  %225 = vlog2.f32 %v51_v10  ;;  %v55_v13 = vadd.f32 1.0, %v54_v11  ;;  %vm58_vm0 = vcmp.lt.f32.partialorder %v57_v14, 0.0004427343 }
  0x1e   :  { %v56_v16 = vmul.f32 %v224_v9, %v55_v13 }
  0x20   :  { %135 = vmatpush.bf16.msra.mxu0 %v211_v12 }
  0x22   :  { %v226_v17 = vpop.eup %225 }
  0x23   :  { %v53_v19 = vmul.f32 0.6931472, %v226_v17 }
  0x24   :  { %136 = vmatpush.bf16.msra.mxu0 %v210_v15 }
  0x25   :  { %v59_v21 = vsel %vm58_vm0, %v56_v16, %v53_v19 }
  0x26   :  { %v60_v22 = vadd.f32 %v59_v21, %v46_v18 }
  0x28   :  { %137 = vmatpush.bf16.msra.mxu0 %v209_v20  ;;  %v77_v23 = vpack.c.bf16 %v60_v22, %v60_v22 }
  0x2b   :  { %138 = vmatmul.bf16.vlgmr.msra.gmra.mxu0 %v77_v23 }
  0xa8   :  { %v139_v25 = vpop.f32.mrf.mxu0 }
  0xa9   :  { %v140_v26 = vadd.f32 %v222_v24, %v139_v25 }
  0xab   :  { %v144_v27 = vand.u32 2147483647, %v140_v26  ;;  %v143_v39 = vmax.f32 %v140_v26, 0.0 }
  0xad   :  { %v145_v28 = vsub.f32 0.0, %v144_v27 }
  0xaf   :  { %v146_v29 = vmul.f32 1.442695, %v145_v28 }
  0xb0   :  { %v141_v30 = vpop.f32.mrf.mxu0 }
  0xb1   :  { %227 = vpow2.f32 %v146_v29 }
  0xb7   :  { %v228_v31 = vpop.eup %227 }
  0xb8   :  { %v148_v32 = vadd.f32 1.0, %v228_v31  ;;  %v151_v33 = vmul.f32 -0.5, %v228_v31  ;;  %v154_v35 = vand.u32 2147483647, %v228_v31 }
  0xba   :  { %229 = vlog2.f32 %v148_v32  ;;  %v152_v34 = vadd.f32 1.0, %v151_v33  ;;  %vm155_vm1 = vcmp.lt.f32.partialorder %v154_v35, 0.0004427343 }
  0xbc   :  { %v153_v38 = vmul.f32 %v228_v31, %v152_v34 }
  0xc0   :  { %v230_v36 = vpop.eup %229 }
  0xc1   :  { %v150_v37 = vmul.f32 0.6931472, %v230_v36 }
  0xc3   :  { %v156_v40 = vsel %vm155_vm1, %v153_v38, %v150_v37 }
  0xc4   :  { %v157_v41 = vadd.f32 %v156_v40, %v143_v39 }
  0xc6   :  { %158 = vst [vmem:[#allocation7] sm:$0xff] %v157_v41 }
  0xc7   :  { %169 = dma.vmem_to_hbm [thread:$0]  %s165_s25, 128, %s167_s27, [#allocation4]  }
  0xc8   :  { %307 = dma.done.wait [#allocation4], 128  }
  0xc9   :  { %308 = vsyncadd [#allocation4], 4294967168 }
  0xca   :  { %174 = vsyncpa [#allocation3], 1 }
  0xcb   :  { %175 = vsyncpa [#allocation6], 1 }
  0xcc   :  { %176 = vsyncpa [#allocation4], 1 }

</bundles_post_ra>
